<compile_context>
chip_gen: v7x
topology: tpu7x:2x2x1
jax: 0.10.0
libtpu: 0.0.40
codegen_flags: <defaults>
</compile_context>

<pallas_src>
import functools

import jax
import jax.numpy as jnp
from jax import lax
from jax.experimental import pallas as pl
from jax.experimental.pallas import tpu as pltpu

_LANE = 128                      # TPU lane width
_VMEM_BUDGET = 40 << 20          # conservative: fits v7x 64 MiB with headroom
_RESIDENT_W_MAX = 12 << 20       # above this, stream the weight over E
_TARGET_STREAM_BYTES = 4 << 20   # >= 4 MiB of streamed bytes per grid step


def _round_up(v, m):
    return (v + m - 1) // m * m


# --------------------------------------------------------------------------
# Kernels
# --------------------------------------------------------------------------
def _linear_resident_kernel(x_ref, w_ref, b_ref, o_ref):
    # x:(TM,E) @ w:(E,C_pad) on the MXU, fp32 accumulate, bias add, store.
    acc = jnp.dot(
        x_ref[...],
        w_ref[...],
        preferred_element_type=jnp.float32,
        precision=lax.Precision.HIGHEST,
    )
    o_ref[...] = (acc + b_ref[...]).astype(o_ref.dtype)


def _linear_ktiled_kernel(x_ref, w_ref, b_ref, o_ref, acc_ref):
    # Contraction dim E streamed in (TK, C_pad) weight slabs; fp32 accumulator.
    k = pl.program_id(1)

    @pl.when(k == 0)
    def _init():
        acc_ref[...] = jnp.zeros_like(acc_ref)

    acc_ref[...] += jnp.dot(
        x_ref[...],
        w_ref[...],
        preferred_element_type=jnp.float32,
        precision=lax.Precision.HIGHEST,
    )

    @pl.when(k == pl.num_programs(1) - 1)
    def _finalize():
        o_ref[...] = (acc_ref[...] + b_ref[...]).astype(o_ref.dtype)


# --------------------------------------------------------------------------
# Parameter preparation (outside the hot path)
# --------------------------------------------------------------------------
def prepare_params(weight, bias, dtype=jnp.float32):
    """One-time param prep.

    weight: [C, E] torch nn.Linear layout; bias: [C].
    Returns (w_pad [E, C_pad], b_pad [1, C_pad]): class dim zero-padded to a
    multiple of 128 (lane-dense output / weight tiles) and weight
    pre-transposed to the canonical [K, N] MXU layout.  Bias stays fp32
    (accumulation dtype).  Pass dtype=jnp.bfloat16 on v6e/v7x to halve the
    weight's HBM/VMEM traffic (keep x bf16 upstream too for the full win).
    """
    weight = jnp.asarray(weight, jnp.float32)
    bias = jnp.asarray(bias, jnp.float32)
    c, e = weight.shape
    c_pad = _round_up(c, _LANE)
    w_pad = jnp.zeros((e, c_pad), dtype).at[:, :c].set(weight.T.astype(dtype))
    b_pad = jnp.zeros((1, c_pad), jnp.float32).at[0, :c].set(bias)
    return w_pad, b_pad


# --------------------------------------------------------------------------
# Tile-size selection
# --------------------------------------------------------------------------
def _choose_tm(n, per_row_stream_bytes, per_row_vmem_bytes, tile_budget_bytes):
    # Target multi-MiB streamed bytes per grid step (amortize ~0.35us/step),
    # capped by the VMEM tile budget and by ceil(N/2) (keep both v7x TCs busy).
    tm_target = max(512, _TARGET_STREAM_BYTES // max(per_row_stream_bytes, 1))
    tm_vmem = max(8, tile_budget_bytes // max(per_row_vmem_bytes, 1))
    tm = min(tm_target, tm_vmem)
    half_n = _round_up((n + 1) // 2, 8)
    tm = min(tm, half_n)
    tm = max(8, (tm // 8) * 8)
    return n if tm >= n else tm


def _choose_tk(e, c_pad, w_itemsize, tk_max):
    # (TK, C_pad) weight slab, double-buffered, kept around <= 8 MiB.
    # TK must be a multiple of 128 dividing E exactly (partial reduction blocks
    # would read garbage into the accumulator).
    if e % _LANE != 0:
        return None
    budget_tk = max(_LANE, (8 << 20) // max(1, 2 * c_pad * w_itemsize))
    tk = budget_tk if tk_max is None else min(budget_tk, tk_max)
    tk = (min(e, tk) // _LANE) * _LANE
    while tk >= _LANE and e % tk != 0:
        tk -= _LANE
    return tk if tk >= _LANE else None


def _invariant_spec(block_shape, index_map, single_buffer):
    # Single-buffer invariant operands (constant index_map): halves their VMEM
    # footprint (important for large resident weights on v7x).
    if single_buffer:
        return pl.BlockSpec(block_shape, index_map, pipeline_mode=pl.Buffered(1))
    return pl.BlockSpec(block_shape, index_map)


# --------------------------------------------------------------------------
# Forward pass
# --------------------------------------------------------------------------
@functools.partial(
    jax.jit,
    static_argnames=("single_buffer", "w_resident_max_bytes", "tk_max"),
)
def _node_classifier_padded(x, w_pad, b_pad, *, single_buffer=True,
                            w_resident_max_bytes=_RESIDENT_W_MAX, tk_max=None):
    """x: [N, E]; w_pad: [E, C_pad]; b_pad: [1, C_pad]. Returns padded logits
    [N, C_pad] (padded class columns are exactly 0.0 — mask before argmax)."""
    n, e = x.shape
    e_w, c_pad = w_pad.shape
    assert e_w == e and c_pad % _LANE == 0

    x_item = x.dtype.itemsize
    w_item = w_pad.dtype.itemsize
    out_item = x_item
    weight_bytes = e * c_pad * w_item
    bias_bytes = c_pad * 4

    stream_k = weight_bytes > w_resident_max_bytes
    tk = None
    if stream_k:
        tk = _choose_tk(e, c_pad, w_item, tk_max)
        if tk is None or tk >= e:
            # TODO(synk): E not 128-divisible with a huge weight falls back to
            # the resident path and may exceed v7x VMEM; pad E upstream then.
            stream_k = False

    if not stream_k:
        # Weight + bias resident in VMEM; stream x row-blocks / out row-blocks.
        w_bufs = 1 if single_buffer else 2
        tile_budget = max(_VMEM_BUDGET - w_bufs * weight_bytes - 2 * bias_bytes,
                          2 << 20)
        per_row_stream = e * x_item + c_pad * out_item
        per_row_vmem = 2 * (e * x_item + c_pad * out_item)  # double-buffered
        tm = _choose_tm(n, per_row_stream, per_row_vmem, tile_budget)
        footprint = w_bufs * weight_bytes + 2 * bias_bytes + tm * per_row_vmem

        grid = (pl.cdiv(n, tm),)
        kernel = _linear_resident_kernel
        in_specs = [
            pl.BlockSpec((tm, e), lambda i: (i, 0)),                       # x
            _invariant_spec((e, c_pad), lambda i: (0, 0), single_buffer),  # W
            _invariant_spec((1, c_pad), lambda i: (0, 0), single_buffer),  # b
        ]
        out_specs = pl.BlockSpec((tm, c_pad), lambda i: (i, 0))
        scratch = []
        dims = ("parallel",)
    else:
        # Stream the weight over E with an fp32 accumulator (large-E / v7x).
        w_slab_bytes = 2 * tk * c_pad * w_item
        tile_budget = max(_VMEM_BUDGET - w_slab_bytes - 2 * bias_bytes, 2 << 20)
        per_row_stream = tk * x_item
        per_row_vmem = 2 * tk * x_item + 2 * c_pad * out_item + c_pad * 4
        tm = _choose_tm(n, per_row_stream, per_row_vmem, tile_budget)
        footprint = w_slab_bytes + 2 * bias_bytes + tm * per_row_vmem

        grid = (pl.cdiv(n, tm), e // tk)
        kernel = _linear_ktiled_kernel
        in_specs = [
            pl.BlockSpec((tm, tk), lambda i, k: (i, k)),                      # x
            pl.BlockSpec((tk, c_pad), lambda i, k: (k, 0)),                   # W
            _invariant_spec((1, c_pad), lambda i, k: (0, 0), single_buffer),  # b
        ]
        out_specs = pl.BlockSpec((tm, c_pad), lambda i, k: (i, 0))
        scratch = [pltpu.VMEM((tm, c_pad), jnp.float32)]
        dims = ("parallel", "arbitrary")

    vmem_limit = int(min(max(footprint + (4 << 20), 32 << 20), 112 << 20))

    return pl.pallas_call(
        kernel,
        out_shape=jax.ShapeDtypeStruct((n, c_pad), x.dtype),
        grid=grid,
        in_specs=in_specs,
        out_specs=out_specs,
        scratch_shapes=scratch,
        compiler_params=pltpu.CompilerParams(
            dimension_semantics=dims,
            vmem_limit_bytes=vmem_limit,
        ),
    )(x, w_pad, b_pad)


_SINGLE_BUFFER_OK = None  # cached capability probe for pl.Buffered(1)


def node_classifier_forward_padded(x, w_pad, b_pad, **kwargs):
    """Hot path: padded [N, C_pad] logits, no post-kernel slice."""
    global _SINGLE_BUFFER_OK
    if _SINGLE_BUFFER_OK is None:
        try:
            out = _node_classifier_padded(x, w_pad, b_pad,
                                          single_buffer=True, **kwargs)
            out = jax.block_until_ready(out)
            _SINGLE_BUFFER_OK = True
            return out
        except Exception:
            # This JAX build rejected single-buffered invariant operands;
            # fall back to the default double-buffered specs.
            _SINGLE_BUFFER_OK = False
    return _node_classifier_padded(x, w_pad, b_pad,
                                   single_buffer=_SINGLE_BUFFER_OK, **kwargs)


def node_classifier_forward(x, w_pad, b_pad, num_classes, **kwargs):
    """Exact nn.Linear semantics ([N, num_classes]).  Note: the trailing slice
    is an extra HBM round trip; prefer consuming the padded logits directly
    (mask padded columns to -inf before any argmax/softmax)."""
    return node_classifier_forward_padded(x, w_pad, b_pad, **kwargs)[:, :num_classes]


# --------------------------------------------------------------------------
if __name__ == "__main__":
    # Small shapes consistent with the module: N nodes, embedding_dim, classes.
    N, EMBEDDING_DIM, NUM_CLASSES = 64, 32, 8

    key = jax.random.PRNGKey(0)
    kx, kw, kb = jax.random.split(key, 3)

    x = jax.random.normal(kx, (N, EMBEDDING_DIM), dtype=jnp.float32)
    # Deterministic torch.nn.Linear-style params (uniform in +-1/sqrt(E)).
    bound = 1.0 / (EMBEDDING_DIM ** 0.5)
    weight = jax.random.uniform(kw, (NUM_CLASSES, EMBEDDING_DIM),
                                minval=-bound, maxval=bound, dtype=jnp.float32)
    bias = jax.random.uniform(kb, (NUM_CLASSES,),
                              minval=-bound, maxval=bound, dtype=jnp.float32)

    # One-time parameter preparation (transpose + lane padding).
    w_pad, b_pad = prepare_params(weight, bias)

    # Hot path: padded, lane-dense logits.
    logits_pad = node_classifier_forward_padded(x, w_pad, b_pad)
    logits_pad = jax.block_until_ready(logits_pad)

    out = logits_pad[:, :NUM_CLASSES]        # exact nn.Linear output
    ref = x @ weight.T + bias
    assert out.shape == (N, NUM_CLASSES)
    assert jnp.allclose(out, ref, atol=1e-5, rtol=1e-5), \
        float(jnp.max(jnp.abs(out - ref)))
    # Padded class columns must be exactly zero (safe to mask downstream).
    assert jnp.all(logits_pad[:, NUM_CLASSES:] == 0.0)

    # Also exercise the E-streamed (large-weight) path at a small size by
    # forcing streaming + a 128-wide K tile.
    N2, E2, C2 = 64, 256, 10
    kx2, kw2, kb2 = jax.random.split(jax.random.PRNGKey(1), 3)
    x2 = jax.random.normal(kx2, (N2, E2), dtype=jnp.float32)
    bound2 = 1.0 / (E2 ** 0.5)
    weight2 = jax.random.uniform(kw2, (C2, E2),
                                 minval=-bound2, maxval=bound2, dtype=jnp.float32)
    bias2 = jax.random.uniform(kb2, (C2,),
                               minval=-bound2, maxval=bound2, dtype=jnp.float32)
    w2_pad, b2_pad = prepare_params(weight2, bias2)
    out2_pad = node_classifier_forward_padded(x2, w2_pad, b2_pad,
                                              w_resident_max_bytes=0, tk_max=128)
    out2 = jax.block_until_ready(out2_pad)[:, :C2]
    ref2 = x2 @ weight2.T + bias2
    assert jnp.allclose(out2, ref2, atol=1e-4, rtol=1e-5), \
        float(jnp.max(jnp.abs(out2 - ref2)))

    print("KERNEL_OK")
</pallas_src>

<mosaic_0001>
module attributes {stable_mosaic.version = 11 : i64} {
  func.func @_linear_resident_kernel(%arg0: i32, %arg1: memref<32x32xf32, #tpu.memory_space<vmem>>, %arg2: memref<32x128xf32, #tpu.memory_space<vmem>>, %arg3: memref<1x128xf32, #tpu.memory_space<vmem>>, %arg4: memref<32x128xf32, #tpu.memory_space<vmem>>) attributes {dimension_semantics = [#tpu.dimension_semantics<parallel>], iteration_bounds = array<i64: 2>, scalar_prefetch = 0 : i64, scratch_operands = 0 : i64, tpu.core_type = #tpu.core_type<tc>, window_params = [{transform_indices = @transform_0, window_bounds = array<i64: 32, 32>}, {pipeline_mode = #tpu.pipeline_mode<synchronous>, transform_indices = @transform_1, window_bounds = array<i64: 32, 128>}, {pipeline_mode = #tpu.pipeline_mode<synchronous>, transform_indices = @transform_2, window_bounds = array<i64: 1, 128>}, {transform_indices = @transform_3, window_bounds = array<i64: 32, 128>}]} {
    %c0 = arith.constant 0 : index
    %c0_0 = arith.constant 0 : index
    %0 = vector.load %arg1[%c0, %c0_0] : memref<32x32xf32, #tpu.memory_space<vmem>>, vector<32x32xf32>
    %c0_1 = arith.constant 0 : index
    %c0_2 = arith.constant 0 : index
    %1 = vector.load %arg2[%c0_1, %c0_2] : memref<32x128xf32, #tpu.memory_space<vmem>>, vector<32x128xf32>
    %cst = arith.constant dense<0.000000e+00> : vector<32x128xf32>
    %2 = tpu.matmul %0, %1, %cst {dimension_numbers = #tpu.dot_dimension_numbers<[1], [0], [0], [1], [0, 0, 1, 1], [], []>, precision = #tpu.contract_precision<fp32>} : vector<32x32xf32>, vector<32x128xf32>, vector<32x128xf32> -> vector<32x128xf32>
    %c0_3 = arith.constant 0 : index
    %c0_4 = arith.constant 0 : index
    %3 = vector.load %arg3[%c0_3, %c0_4] : memref<1x128xf32, #tpu.memory_space<vmem>>, vector<1x128xf32>
    %4 = vector.broadcast %3 : vector<1x128xf32> to vector<32x128xf32>
    %5 = arith.addf %2, %4 : vector<32x128xf32>
    %c0_5 = arith.constant 0 : index
    %c0_6 = arith.constant 0 : index
    %6 = vector.load %arg4[%c0_5, %c0_6] : memref<32x128xf32, #tpu.memory_space<vmem>>, vector<32x128xf32>
    tpu.vector_store %arg4[%c0_5, %c0_6], %5 {strides = array<i32>} : memref<32x128xf32, #tpu.memory_space<vmem>>, vector<32x128xf32>,
    return
  }
  func.func @transform_0(%arg0: i32) -> (i32, i32) {
    %c0_i32 = arith.constant 0 : i32
    %c0_i32_0 = arith.constant 0 : i32
    return %arg0, %c0_i32 : i32, i32
  }
  func.func @transform_1(%arg0: i32) -> (i32, i32) {
    %c0_i32 = arith.constant 0 : i32
    %c0_i32_0 = arith.constant 0 : i32
    %c0_i32_1 = arith.constant 0 : i32
    return %c0_i32, %c0_i32_0 : i32, i32
  }
  func.func @transform_2(%arg0: i32) -> (i32, i32) {
    %c0_i32 = arith.constant 0 : i32
    %c0_i32_0 = arith.constant 0 : i32
    %c0_i32_1 = arith.constant 0 : i32
    return %c0_i32, %c0_i32_0 : i32, i32
  }
  func.func @transform_3(%arg0: i32) -> (i32, i32) {
    %c0_i32 = arith.constant 0 : i32
    %c0_i32_0 = arith.constant 0 : i32
    return %arg0, %c0_i32 : i32, i32
  }
}

module attributes {stable_mosaic.version = 11 : i64} {
  func.func @_linear_resident_kernel(%arg0: i32, %arg1: memref<32x32xf32, #tpu.memory_space<vmem>>, %arg2: memref<32x128xf32, #tpu.memory_space<vmem>>, %arg3: memref<1x128xf32, #tpu.memory_space<vmem>>, %arg4: memref<32x128xf32, #tpu.memory_space<vmem>>) attributes {dimension_semantics = [#tpu.dimension_semantics<parallel>], iteration_bounds = array<i64: 2>, scalar_prefetch = 0 : i64, scratch_operands = 0 : i64, tpu.core_type = #tpu.core_type<tc>, window_params = [{transform_indices = @transform_0, window_bounds = array<i64: 32, 32>}, {pipeline_mode = #tpu.pipeline_mode<synchronous>, transform_indices = @transform_1, window_bounds = array<i64: 32, 128>}, {pipeline_mode = #tpu.pipeline_mode<synchronous>, transform_indices = @transform_2, window_bounds = array<i64: 1, 128>}, {transform_indices = @transform_3, window_bounds = array<i64: 32, 128>}]} {
    %c0 = arith.constant 0 : index
    %c0_0 = arith.constant 0 : index
    %0 = vector.load %arg1[%c0, %c0_0] : memref<32x32xf32, #tpu.memory_space<vmem>>, vector<32x32xf32>
    %c0_1 = arith.constant 0 : index
    %c0_2 = arith.constant 0 : index
    %1 = vector.load %arg2[%c0_1, %c0_2] : memref<32x128xf32, #tpu.memory_space<vmem>>, vector<32x128xf32>
    %cst = arith.constant dense<0.000000e+00> : vector<32x128xf32>
    %2 = tpu.matmul %0, %1, %cst {dimension_numbers = #tpu.dot_dimension_numbers<[1], [0], [0], [1], [0, 0, 1, 1], [], []>, precision = #tpu.contract_precision<fp32>} : vector<32x32xf32>, vector<32x128xf32>, vector<32x128xf32> -> vector<32x128xf32>
    %c0_3 = arith.constant 0 : index
    %c0_4 = arith.constant 0 : index
    %3 = vector.load %arg3[%c0_3, %c0_4] : memref<1x128xf32, #tpu.memory_space<vmem>>, vector<1x128xf32>
    %4 = vector.broadcast %3 : vector<1x128xf32> to vector<32x128xf32>
    %5 = arith.addf %2, %4 : vector<32x128xf32>
    %c0_5 = arith.constant 0 : index
    %c0_6 = arith.constant 0 : index
    %6 = vector.load %arg4[%c0_5, %c0_6] : memref<32x128xf32, #tpu.memory_space<vmem>>, vector<32x128xf32>
    tpu.vector_store %arg4[%c0_5, %c0_6], %5 {strides = array<i32>} : memref<32x128xf32, #tpu.memory_space<vmem>>, vector<32x128xf32>,
    return
  }
  func.func @transform_0(%arg0: i32) -> (i32, i32) {
    %c0_i32 = arith.constant 0 : i32
    %c0_i32_0 = arith.constant 0 : i32
    return %arg0, %c0_i32 : i32, i32
  }
  func.func @transform_1(%arg0: i32) -> (i32, i32) {
    %c0_i32 = arith.constant 0 : i32
    %c0_i32_0 = arith.constant 0 : i32
    %c0_i32_1 = arith.constant 0 : i32
    return %c0_i32, %c0_i32_0 : i32, i32
  }
  func.func @transform_2(%arg0: i32) -> (i32, i32) {
    %c0_i32 = arith.constant 0 : i32
    %c0_i32_0 = arith.constant 0 : i32
    %c0_i32_1 = arith.constant 0 : i32
    return %c0_i32, %c0_i32_0 : i32, i32
  }
  func.func @transform_3(%arg0: i32) -> (i32, i32) {
    %c0_i32 = arith.constant 0 : i32
    %c0_i32_0 = arith.constant 0 : i32
    return %arg0, %c0_i32 : i32, i32
  }
}

</mosaic_0001>

<bundles_post_ra>
// kernel: _node_classifier_padded.1
= control target key start
LH: loop header
LB: loop body
LE: loop exit
PB: predicated region body
PF: predicated region fallthrough
CT: control target
= control target key end

     0   :  { %8 = vsyncpa [#allocation3], 0  ;;  %s1409_s0 = inlined_call_operand.vmem [shape: f32[64,32], index: 0, kind: input, shape index: {}]   ;;  %s1410_s1 = inlined_call_operand.vmem [shape: f32[32,128], index: 1, kind: input, shape index: {}]   ;;  %s1411_s2 = inlined_call_operand.vmem [shape: f32[1,128], index: 2, kind: input, shape index: {}]   ;;  %s1412_s3 = inlined_call_operand.hbm [shape: f32[64,128], index: 3, kind: output, shape index: {}]  }
   0x1   :  { %10 = vsyncpa [#allocation3 + $0x1], 0  ;;  %s1240_s12 = smov 0   ;;  %s1242_s13 = smov 0  }
   0x2   :  { %s1244_s14 = smov 0   ;;  %s1246_s15 = smov 0  }
   0x3 LB: > { %s1261_s16 = sadd.s32 4294967295, %s1215_s15   ;;  %s894_s17 = sadd.s32 4294967294, %s1215_s15   ;;  %s1215_s15 = sphi %s1246_s15, %s1418_s15   ;;  %s1211_s14 = sphi %s1244_s14, %s1417_s14   ;;  %s1207_s13 = sphi %s1242_s13, %s1416_s13   ;;  %s1203_s12 = sphi %s1240_s12, %s1415_s12  }
   0x4   : > { %s1265_s18 = sadd.s32 1, %s1215_s15   ;;  %s91_s19 = sadd.s32 1, %s1211_s14 }
   0x5   : > { %s88_s20 = ssub.s32 %s1215_s15, %s1265_s18  ;;  %p101_p0 = scmp.ne.s32.totalorder %s1211_s14, %s1207_s13 }
   0x6   : > { %p89_p1 = scmp.eq.s32.totalorder %s88_s20, 0  ;;  %p102_p2 = scmp.eq.s32.totalorder %s1261_s16, 1 }
   0x7   : > { %p107_p3 = scmp.ne.s32.totalorder %s1207_s13, %s1203_s12  ;;  %p108_p4 = scmp.eq.s32.totalorder %s894_s17, 1 }
   0x8   : > { %s1276_s21 = scalar_select %p89_p1, %s1211_s14, %s91_s19  }
   0x9   : > { %p1278_p5 = por %p102_p2, %p101_p0  ;;  %p1282_p6 = por %p108_p4, %p107_p3 }
   0xa   : > { %p897_p7 = scmp.ge.s32.totalorder %s1215_s15, 1  ;;  %p141_p8 = scmp.lt.s32.totalorder %s1215_s15, 3 }
   0xc   : > { %p142_p9 = pnand %p897_p7, %p141_p8 }
   0xd   : > { %v176_v0 = vld [vmem:[%s1410_s1] sm:$0xff] (!%p142_p9)  ;;  %v177_v1 = vld [vmem:[%s1410_s1 + $0x8] sm:$0xff] (!%p142_p9)  ;;  %v178_v2 = vld [vmem:[%s1410_s1 + $0x10] sm:$0xff] (!%p142_p9)  ;;  %s899_s30 = sshll.u32 (!%p142_p9), %s1261_s16, 2  ;;  %vm187_vm0 = vcmask (!%p142_p9), 261120   ;;  %s162_s10 = sand.u32 (!%p142_p9), 1, %s1207_s13  }
   0xe   : > { %145 = sbr.rel (%p142_p9) target bundleno = 289 (0x121), region = 32  ;;  %v201_v3 = vand.u32 (!%p142_p9), 4294901760, %v176_v0  ;;  %v204_v4 = vand.u32 (!%p142_p9), 4294901760, %v177_v1  ;;  %v179_v5 = vld [vmem:[%s1410_s1 + $0x18] sm:$0xff] (!%p142_p9)  ;;  %v207_v6 = vand.u32 (!%p142_p9), 4294901760, %v178_v2  ;;  %p166_p10 = scmp.lt.s32.totalorder (!%p142_p9), %s899_s30, 7 }
   0xf   : > { %v210_v7 = vand.u32 (!%p142_p9), 4294901760, %v179_v5  ;;  %v901_v62 = vld [vmem:[%s1411_s2] ss:$0 sm:$0xff] (!%p142_p9)  ;;  %s898_s19 = sshll.u32 (!%p142_p9), %s162_s10, 5  ;;  %s907_s25 = sshll.u32 (!%p142_p9), %s1261_s16, 9 }
  0x10   : > { %v1301_v8 = vpack.c.bf16 (!%p142_p9), %v204_v4, %v201_v3  ;;  %v1303_v9 = vsub.f32 (!%p142_p9), %v176_v0, %v201_v3  ;;  %v1305_v10 = vsub.f32 (!%p142_p9), %v177_v1, %v204_v4  ;;  %v1307_v11 = vsub.f32 (!%p142_p9), %v178_v2, %v207_v6  ;;  %s164_s20 = scalar_lea.vmem (!%p142_p9), [#allocation2], %s898_s19  ;;  %s1366_s28 = scalar_lea.hbm (!%p142_p9), %s1412_s3, %s907_s25 }
  0x11   : > { %v1309_v12 = vpack.c.bf16 (!%p142_p9), %v210_v7, %v207_v6  ;;  %v1311_v13 = vsub.f32 (!%p142_p9), %v179_v5, %v210_v7  ;;  %s832_s24 = sshll.u32 (!%p142_p9), %s164_s20, 4  ;;  %s1368_s16 = scalar_lea.sflag (!%p142_p9), [#allocation3], %s162_s10  ;;  %s1361_s24 = int_to_ptr.vmem [resolvable:$true] %s832_s24 }
  0x12   : > { %1065 = vmatprep.subr.bf16.mxu0 (!%p142_p9), %v1301_v8  ;;  %1041 = vmatprep.subr.bf16.mxu1 (!%p142_p9), %v1301_v8  ;;  %v312_v14 = vand.u32 (!%p142_p9), 4294901760, %v1303_v9  ;;  %v319_v15 = vand.u32 (!%p142_p9), 4294901760, %v1305_v10  ;;  %v326_v16 = vand.u32 (!%p142_p9), 4294901760, %v1307_v11  ;;  %v1056_v58 = vpack.c.bf16 (!%p142_p9), %v1305_v10, %v1303_v9  ;;  %s1153_s29 = scalar_lea.vmem (!%p142_p9), %s1361_s24, 512 }
  0x13   : > { %1067 = vmatpush3.bf16.msra.mxu0 (!%p142_p9), %v1301_v8  ;;  %1043 = vmatpush3.bf16.msra.mxu1 (!%p142_p9), %v1301_v8  ;;  %v333_v17 = vand.u32 (!%p142_p9), 4294901760, %v1311_v13  ;;  %v1060_v59 = vpack.c.bf16 (!%p142_p9), %v1311_v13, %v1307_v11  ;;  %p1154_p11 = scmp.ne.s32.totalorder (!%p142_p9), %s1361_s24, %s1153_s29 }
  0x14   : > { %1069 = vmatprep.subr.bf16.mxu0 (!%p142_p9), %v1309_v12  ;;  %1045 = vmatprep.subr.bf16.mxu1 (!%p142_p9), %v1309_v12  ;;  %v1072_v20 = vpack.c.bf16 (!%p142_p9), %v319_v15, %v312_v14  ;;  %v313_v21 = vsub.f32 (!%p142_p9), %v1303_v9, %v312_v14  ;;  %v320_v22 = vsub.f32 (!%p142_p9), %v1305_v10, %v319_v15 }
  0x15   : > { %s1420_s30 = smov (!%p166_p10, %s899_s30), 7  ;;  %v327_v34 = vsub.f32 %v1307_v11, %v326_v16  ;;  %v334_v35 = vsub.f32 %v1311_v13, %v333_v17  ;;  %v1076_v45 = vpack.c.bf16 %v333_v17, %v326_v16  ;;  %p1155_p12 = pnand %p1154_p11, %p1278_p5 }
  0x16   : > { %s900_s6 = sshll.u32 %s1420_s30, 3  ;;  %v314_v30 = vand.u32 4294901760, %v313_v21  ;;  %v321_v31 = vand.u32 4294901760, %v320_v22  ;;  %s1217_s30 = smov [#allocation2]  }
  0x17   : > { %s169_s9 = scalar_lea.vmem %s1409_s0, %s900_s6  ;;  %1071 = vmatpush3.bf16.msra.mxu0 %v1309_v12  ;;  %1047 = vmatpush3.bf16.msra.mxu1 %v1309_v12  ;;  %v328_v46 = vand.u32 4294901760, %v327_v34  ;;  %v335_v47 = vand.u32 4294901760, %v334_v35  ;;  %p1156_p13 = pneg %p1155_p12 }
  0x18   : > { %v172_v18 = vld [vmem:[%s169_s9] sm:$0xff]  ;;  %v173_v19 = vld [vmem:[%s169_s9 + $0x8] sm:$0xff]  ;;  %v174_v23 = vld [vmem:[%s169_s9 + $0x10] sm:$0xff]  ;;  %1073 = vmatprep.subr.bf16.mxu0 %v1072_v20  ;;  %v1048_v38 = vpack.c.bf16 %v321_v31, %v314_v30  ;;  %s1157_s4 = sshll.u32 %s1217_s30, 4  ;;  %s1158_s4 = int_to_ptr.vmem [resolvable:$false] %s1157_s4 }
  0x19   : > { %v189_v24 = vsel %vm187_vm0, %v172_v18, 0  ;;  %v192_v25 = vsel %vm187_vm0, %v173_v19, 0  ;;  %v195_v26 = vsel %vm187_vm0, %v174_v23, 0  ;;  %v175_v27 = vld [vmem:[%s169_s9 + $0x18] sm:$0xff]  ;;  %v1052_v56 = vpack.c.bf16 %v335_v47, %v328_v46  ;;  %s1159_s5 = scalar_lea.vmem %s1158_s4, 1024  ;;  %p1160_p0 = scmp.lt.s32.totalorder %s1361_s24, %s1158_s4 }
  0x1a   : > { %v1331_v28 = vand.u32 4294901760, %v189_v24  ;;  %v1333_v29 = vand.u32 4294901760, %v192_v25  ;;  %v289_v32 = vand.u32 4294901760, %v195_v26  ;;  %v198_v33 = vsel %vm187_vm0, %v175_v27, 0  ;;  %1049 = vmatprep.subr.bf16.mxu1 %v1048_v38  ;;  %p1161_p1 = scmp.lt.s32.totalorder %s1159_s5, %s1153_s29 }
  0x1b   : > { %v299_v39 = vand.u32 4294901760, %v198_v33 }
  0x1c   : > { %v270_v36 = vsub.f32 %v189_v24, %v1331_v28  ;;  %v280_v37 = vsub.f32 %v192_v25, %v1333_v29  ;;  %v290_v40 = vsub.f32 %v195_v26, %v289_v32  ;;  %p1162_p2 = por %p1161_p1, %p1160_p0 }
  0x1d   : > { %v300_v43 = vsub.f32 %v198_v33, %v299_v39 }
  0x1e   : > { %v271_v41 = vand.u32 4294901760, %v270_v36  ;;  %v281_v42 = vand.u32 4294901760, %v280_v37  ;;  %v291_v44 = vand.u32 4294901760, %v290_v40  ;;  %p1163_p3 = pnand %p1162_p2, %p1156_p13 }
  0x1f   : > { %v301_v50 = vand.u32 4294901760, %v300_v43 }
  0x20   : > { %1006 = vmatprep.mubr.f32.mxu0 %v271_v41  ;;  %v272_v48 = vsub.f32 %v270_v36, %v271_v41  ;;  %v282_v49 = vsub.f32 %v280_v37, %v281_v42  ;;  %v292_v51 = vsub.f32 %v290_v40, %v291_v44 }
  0x21   : > { %1007 = vmatmul.mubr.f32.vlgmr.msra.gmra.mrb[0].mxu0 %v281_v42  ;;  %v302_v54 = vsub.f32 %v300_v43, %v301_v50 }
  0x22   : > { %1075 = vmatpush3.bf16.msra.mxu0 %v1072_v20  ;;  %v273_v52 = vand.u32 4294901760, %v272_v48  ;;  %1009 = vmatprep.mubr.f32.mxu0 %v291_v44  ;;  %v283_v53 = vand.u32 4294901760, %v282_v49  ;;  %v293_v55 = vand.u32 4294901760, %v292_v51 }
  0x23   : > { %1077 = vmatprep.subr.bf16.mxu0 %v1076_v45  ;;  %v303_v57 = vand.u32 4294901760, %v302_v54 }
  0x24   : > { %964 = vmatprep.mubr.f32.mxu1 %v273_v52 }
  0x25   : > { %965 = vmatmul.mubr.f32.vlgmr.msra.gmra.mrb[0].mxu1 %v283_v53  ;;  %1010 = vmatmul.mubr.f32.gmra.mrb[2].mxu0 %v301_v50 }
  0x26   : > { %1051 = vmatpush3.bf16.msra.mxu1 %v1048_v38  ;;  %1079 = vmatpush3.bf16.msra.mxu0 %v1076_v45 }
  0x27   : > { %967 = vmatprep.mubr.f32.mxu1 %v293_v55  ;;  %1053 = vmatprep.subr.bf16.mxu1 %v1052_v56 }
  0x28   : > { %1020 = vmatprep.mubr.f32.mxu0 %v1331_v28  ;;  %1081 = vmatprep.subr.bf16.mxu0 %v1301_v8 }
  0x29   : > { %968 = vmatmul.mubr.f32.gmra.mrb[2].mxu1 %v303_v57  ;;  %1021 = vmatmul.mubr.f32.vlgmr.msra.gmra.mrb[0].mxu0 %v1333_v29 }
  0x2a   : > { %1055 = vmatpush3.bf16.msra.mxu1 %v1052_v56  ;;  %1083 = vmatpush3.bf16.msra.mxu0 %v1301_v8 }
  0x2b   : > { %978 = vmatprep.mubr.f32.mxu1 %v1331_v28  ;;  %1057 = vmatprep.subr.bf16.mxu1 %v1056_v58 }
  0x2c   : > { %1023 = vmatprep.mubr.f32.mxu0 %v289_v32  ;;  %1085 = vmatprep.subr.bf16.mxu0 %v1309_v12 }
  0x2d   : > { %979 = vmatmul.mubr.f32.vlgmr.msra.gmra.mrb[0].mxu1 %v1333_v29  ;;  %1024 = vmatmul.mubr.f32.gmra.mrb[2].mxu0 %v299_v39 }
  0x2e   : > { %1059 = vmatpush3.bf16.msra.mxu1 %v1056_v58  ;;  %1087 = vmatpush3.bf16.msra.mxu0 %v1309_v12 }
  0x2f   : > { %981 = vmatprep.mubr.f32.mxu1 %v289_v32  ;;  %1061 = vmatprep.subr.bf16.mxu1 %v1060_v59 }
  0x30   : > { %1034 = vmatprep.mubr.f32.mxu0 %v1331_v28 }
  0x31   : > { %982 = vmatmul.mubr.f32.gmra.mrb[2].mxu1 %v299_v39  ;;  %1035 = vmatmul.mubr.f32.vlgmr.msra.gmra.mrb[0].mxu0 %v1333_v29 }
  0x32   : > { %1063 = vmatpush3.bf16.msra.mxu1 %v1060_v59  ;;  %992 = vmatprep.mubr.f32.mxu1 %v270_v36 }
  0x33   : > { %1037 = vmatprep.mubr.f32.mxu0 %v289_v32 }
  0x35   : > { %993 = vmatmul.mubr.f32.vlgmr.msra.gmra.mrb[0].mxu1 %v280_v37  ;;  %1038 = vmatmul.mubr.f32.gmra.mrb[2].mxu0 %v299_v39 }
  0x36   : > { %995 = vmatprep.mubr.f32.mxu1 %v290_v40 }
  0x39   : > { %996 = vmatmul.mubr.f32.gmra.mrb[2].mxu1 %v300_v43 }
 0x104   : > { %v1036_v60 = vpop.f32.mrb[0].mxu0 }
 0x105   : > { %v792_v61 = vpop.f32.mrb[1].mxu0 }
 0x108   : > { %v994_v63 = vpop.f32.mrb[0].mxu1  ;;  %v1039_v0 = vpop.f32.mrb[2].mxu0 }
 0x109   : > { %v1088_v1 = vadd.f32 %v994_v63, %v901_v62  ;;  %v494_v2 = vpop.f32.mrb[1].mxu1  ;;  %v804_v3 = vpop.f32.mrb[3].mxu0 }
 0x10a   : > { %v1090_v4 = vadd.f32 %v901_v62, %v494_v2 }
 0x10b   : > { %v1089_v5 = vadd.f32 %v1088_v1, %v1036_v60 }
 0x10c   : > { %v1091_v6 = vadd.f32 %v1090_v4, %v792_v61  ;;  %v997_v7 = vpop.f32.mrb[2].mxu1 }
 0x10d   : > { %815 = vst [vmem:[%s164_s20 + $0x8] sm:$0xff] %v1089_v5  ;;  %v1092_v8 = vadd.f32 %v997_v7, %v901_v62  ;;  %v508_v9 = vpop.f32.mrb[3].mxu1 }
 0x10e   : > { %814 = vst [vmem:[%s164_s20] sm:$0xff] %v1091_v6  ;;  %v1094_v10 = vadd.f32 %v901_v62, %v508_v9 }
 0x10f   : > { %v1093_v11 = vadd.f32 %v1092_v8, %v1039_v0 }
 0x110   : > { %v1095_v12 = vadd.f32 %v1094_v10, %v804_v3 }
 0x111   : > { %817 = vst [vmem:[%s164_s20 + $0x18] sm:$0xff] %v1093_v11 }
 0x112   : > { %816 = vst [vmem:[%s164_s20 + $0x10] sm:$0xff] %v1095_v12 }
 0x113   : > { %1166 = shalt.err (!%p1163_p3)
}
 0x114   : > { %s1167_s6 = scalar_lea.hbm %s1366_s28, 512  ;;  %s1171_s9 = scalar_lea.hbm %s1412_s3, 1024 }
 0x115   : > { %p1168_p4 = scmp.ne.s32.totalorder %s1366_s28, %s1167_s6  ;;  %p1172_p9 = scmp.lt.u32.totalorder %s1366_s28, %s1412_s3 }
 0x116   : > { %p1173_p10 = scmp.lt.u32.totalorder %s1171_s9, %s1167_s6  ;;  %p1175_p12 = scmp.lt.u32.totalorder %s1167_s6, %s1366_s28 }
 0x117   : > { %p1169_p7 = pnand %p1168_p4, %p1278_p5 }
 0x118   : > { %p1174_p11 = por %p1173_p10, %p1172_p9 }
 0x119   : > { %p1170_p8 = pneg %p1169_p7 }
 0x11a   : > { %p1176_p13 = por %p1175_p12, %p1174_p11 }
 0x11c   : > { %p1177_p0 = pnand %p1176_p13, %p1170_p8 }
 0x11e   : > { %1180 = shalt.err (!%p1177_p0)
}
 0x11f   : > { %s1218_s17 = smov 128   ;;  %s1219_s19 = smov 8  }
 0x120   : > { %1112 = dma.vmem_to_hbm [thread:$0]  (%p1278_p5), %s1361_s24, 512, %s1366_s28, %s1368_s16, %s1218_s17, %s1218_s17, %s1219_s19  }
 0x121 PF: > { %p1118_p1 = scmp.ge.s32.totalorder %s1215_s15, 2  ;;  %s847_s20 = sand.u32 1, %s1203_s12  }
 0x122   : > { %s848_s25 = scalar_lea.sflag [#allocation3], %s847_s20 }
 0x123   : > { %p1115_p2 = pnand %p1118_p1, %p1282_p6 }
 0x125   : > { %1198 = dma.done.wait (!%p1115_p2), %s848_s25, 512  }
 0x126   : > { %1200 = vsyncadd (!%p1115_p2), %s848_s25, 4294966784  ;;  %p13_p3 = scmp.ge.s32.totalorder %s1265_s18, 4   ;;  %s1415_s12 = smov %s1207_s13 }
 0x127   : > { %s1416_s13 = smov %s1211_s14  ;;  %s1417_s14 = smov %s1276_s21 }
 0x128   : > { %s1418_s15 = smov %s1265_s18  ;;  %15 = sbr.rel (!%p13_p3) target bundleno = 3 (0x3), region = 67 }
 0x12f   :  { %853 = vsyncpa [#allocation3], 1 }
 0x130   :  { %855 = vsyncpa [#allocation3 + $0x1], 1 }

// kernel: _node_classifier_padded.1
= control target key start
LH: loop header
LB: loop body
LE: loop exit
PB: predicated region body
PF: predicated region fallthrough
CT: control target
= control target key end

     0   :  { %8 = vsyncpa [#allocation3], 0  ;;  %s1409_s0 = inlined_call_operand.vmem [shape: f32[64,32], index: 0, kind: input, shape index: {}]   ;;  %s1410_s1 = inlined_call_operand.vmem [shape: f32[32,128], index: 1, kind: input, shape index: {}]   ;;  %s1411_s2 = inlined_call_operand.vmem [shape: f32[1,128], index: 2, kind: input, shape index: {}]   ;;  %s1412_s3 = inlined_call_operand.hbm [shape: f32[64,128], index: 3, kind: output, shape index: {}]  }
   0x1   :  { %10 = vsyncpa [#allocation3 + $0x1], 0  ;;  %s1240_s12 = smov 0   ;;  %s1242_s13 = smov 0  }
   0x2   :  { %s1244_s14 = smov 0   ;;  %s1246_s15 = smov 0  }
   0x3 LB: > { %s1261_s16 = sadd.s32 4294967295, %s1215_s15   ;;  %s894_s17 = sadd.s32 4294967294, %s1215_s15   ;;  %s1215_s15 = sphi %s1246_s15, %s1418_s15   ;;  %s1211_s14 = sphi %s1244_s14, %s1417_s14   ;;  %s1207_s13 = sphi %s1242_s13, %s1416_s13   ;;  %s1203_s12 = sphi %s1240_s12, %s1415_s12  }
   0x4   : > { %s1265_s18 = sadd.s32 1, %s1215_s15   ;;  %s91_s19 = sadd.s32 1, %s1211_s14 }
   0x5   : > { %s88_s20 = ssub.s32 %s1215_s15, %s1265_s18  ;;  %p101_p0 = scmp.ne.s32.totalorder %s1211_s14, %s1207_s13 }
   0x6   : > { %p89_p1 = scmp.eq.s32.totalorder %s88_s20, 0  ;;  %p102_p2 = scmp.eq.s32.totalorder %s1261_s16, 1 }
   0x7   : > { %p107_p3 = scmp.ne.s32.totalorder %s1207_s13, %s1203_s12  ;;  %p108_p4 = scmp.eq.s32.totalorder %s894_s17, 1 }
   0x8   : > { %s1276_s21 = scalar_select %p89_p1, %s1211_s14, %s91_s19  }
   0x9   : > { %p1278_p5 = por %p102_p2, %p101_p0  ;;  %p1282_p6 = por %p108_p4, %p107_p3 }
   0xa   : > { %p897_p7 = scmp.ge.s32.totalorder %s1215_s15, 1  ;;  %p141_p8 = scmp.lt.s32.totalorder %s1215_s15, 3 }
   0xc   : > { %p142_p9 = pnand %p897_p7, %p141_p8 }
   0xd   : > { %v176_v0 = vld [vmem:[%s1410_s1] sm:$0xff] (!%p142_p9)  ;;  %v177_v1 = vld [vmem:[%s1410_s1 + $0x8] sm:$0xff] (!%p142_p9)  ;;  %v178_v2 = vld [vmem:[%s1410_s1 + $0x10] sm:$0xff] (!%p142_p9)  ;;  %s899_s30 = sshll.u32 (!%p142_p9), %s1261_s16, 2  ;;  %vm187_vm0 = vcmask (!%p142_p9), 261120   ;;  %s162_s10 = sand.u32 (!%p142_p9), 1, %s1207_s13  }
   0xe   : > { %145 = sbr.rel (%p142_p9) target bundleno = 289 (0x121), region = 32  ;;  %v201_v3 = vand.u32 (!%p142_p9), 4294901760, %v176_v0  ;;  %v204_v4 = vand.u32 (!%p142_p9), 4294901760, %v177_v1  ;;  %v179_v5 = vld [vmem:[%s1410_s1 + $0x18] sm:$0xff] (!%p142_p9)  ;;  %v207_v6 = vand.u32 (!%p142_p9), 4294901760, %v178_v2  ;;  %p166_p10 = scmp.lt.s32.totalorder (!%p142_p9), %s899_s30, 7 }
   0xf   : > { %v210_v7 = vand.u32 (!%p142_p9), 4294901760, %v179_v5  ;;  %v901_v62 = vld [vmem:[%s1411_s2] ss:$0 sm:$0xff] (!%p142_p9)  ;;  %s898_s19 = sshll.u32 (!%p142_p9), %s162_s10, 5  ;;  %s907_s25 = sshll.u32 (!%p142_p9), %s1261_s16, 9 }
  0x10   : > { %v1301_v8 = vpack.c.bf16 (!%p142_p9), %v204_v4, %v201_v3  ;;  %v1303_v9 = vsub.f32 (!%p142_p9), %v176_v0, %v201_v3  ;;  %v1305_v10 = vsub.f32 (!%p142_p9), %v177_v1, %v204_v4  ;;  %v1307_v11 = vsub.f32 (!%p142_p9), %v178_v2, %v207_v6  ;;  %s164_s20 = scalar_lea.vmem (!%p142_p9), [#allocation2], %s898_s19  ;;  %s1366_s28 = scalar_lea.hbm (!%p142_p9), %s1412_s3, %s907_s25 }
  0x11   : > { %v1309_v12 = vpack.c.bf16 (!%p142_p9), %v210_v7, %v207_v6  ;;  %v1311_v13 = vsub.f32 (!%p142_p9), %v179_v5, %v210_v7  ;;  %s832_s24 = sshll.u32 (!%p142_p9), %s164_s20, 4  ;;  %s1368_s16 = scalar_lea.sflag (!%p142_p9), [#allocation3], %s162_s10  ;;  %s1361_s24 = int_to_ptr.vmem [resolvable:$true] %s832_s24 }
  0x12   : > { %1065 = vmatprep.subr.bf16.mxu0 (!%p142_p9), %v1301_v8  ;;  %1041 = vmatprep.subr.bf16.mxu1 (!%p142_p9), %v1301_v8  ;;  %v312_v14 = vand.u32 (!%p142_p9), 4294901760, %v1303_v9  ;;  %v319_v15 = vand.u32 (!%p142_p9), 4294901760, %v1305_v10  ;;  %v326_v16 = vand.u32 (!%p142_p9), 4294901760, %v1307_v11  ;;  %v1056_v58 = vpack.c.bf16 (!%p142_p9), %v1305_v10, %v1303_v9  ;;  %s1153_s29 = scalar_lea.vmem (!%p142_p9), %s1361_s24, 512 }
  0x13   : > { %1067 = vmatpush3.bf16.msra.mxu0 (!%p142_p9), %v1301_v8  ;;  %1043 = vmatpush3.bf16.msra.mxu1 (!%p142_p9), %v1301_v8  ;;  %v333_v17 = vand.u32 (!%p142_p9), 4294901760, %v1311_v13  ;;  %v1060_v59 = vpack.c.bf16 (!%p142_p9), %v1311_v13, %v1307_v11  ;;  %p1154_p11 = scmp.ne.s32.totalorder (!%p142_p9), %s1361_s24, %s1153_s29 }
  0x14   : > { %1069 = vmatprep.subr.bf16.mxu0 (!%p142_p9), %v1309_v12  ;;  %1045 = vmatprep.subr.bf16.mxu1 (!%p142_p9), %v1309_v12  ;;  %v1072_v20 = vpack.c.bf16 (!%p142_p9), %v319_v15, %v312_v14  ;;  %v313_v21 = vsub.f32 (!%p142_p9), %v1303_v9, %v312_v14  ;;  %v320_v22 = vsub.f32 (!%p142_p9), %v1305_v10, %v319_v15 }
  0x15   : > { %s1420_s30 = smov (!%p166_p10, %s899_s30), 7  ;;  %v327_v34 = vsub.f32 %v1307_v11, %v326_v16  ;;  %v334_v35 = vsub.f32 %v1311_v13, %v333_v17  ;;  %v1076_v45 = vpack.c.bf16 %v333_v17, %v326_v16  ;;  %p1155_p12 = pnand %p1154_p11, %p1278_p5 }
  0x16   : > { %s900_s6 = sshll.u32 %s1420_s30, 3  ;;  %v314_v30 = vand.u32 4294901760, %v313_v21  ;;  %v321_v31 = vand.u32 4294901760, %v320_v22  ;;  %s1217_s30 = smov [#allocation2]  }
  0x17   : > { %s169_s9 = scalar_lea.vmem %s1409_s0, %s900_s6  ;;  %1071 = vmatpush3.bf16.msra.mxu0 %v1309_v12  ;;  %1047 = vmatpush3.bf16.msra.mxu1 %v1309_v12  ;;  %v328_v46 = vand.u32 4294901760, %v327_v34  ;;  %v335_v47 = vand.u32 4294901760, %v334_v35  ;;  %p1156_p13 = pneg %p1155_p12 }
  0x18   : > { %v172_v18 = vld [vmem:[%s169_s9] sm:$0xff]  ;;  %v173_v19 = vld [vmem:[%s169_s9 + $0x8] sm:$0xff]  ;;  %v174_v23 = vld [vmem:[%s169_s9 + $0x10] sm:$0xff]  ;;  %1073 = vmatprep.subr.bf16.mxu0 %v1072_v20  ;;  %v1048_v38 = vpack.c.bf16 %v321_v31, %v314_v30  ;;  %s1157_s4 = sshll.u32 %s1217_s30, 4  ;;  %s1158_s4 = int_to_ptr.vmem [resolvable:$false] %s1157_s4 }
  0x19   : > { %v189_v24 = vsel %vm187_vm0, %v172_v18, 0  ;;  %v192_v25 = vsel %vm187_vm0, %v173_v19, 0  ;;  %v195_v26 = vsel %vm187_vm0, %v174_v23, 0  ;;  %v175_v27 = vld [vmem:[%s169_s9 + $0x18] sm:$0xff]  ;;  %v1052_v56 = vpack.c.bf16 %v335_v47, %v328_v46  ;;  %s1159_s5 = scalar_lea.vmem %s1158_s4, 1024  ;;  %p1160_p0 = scmp.lt.s32.totalorder %s1361_s24, %s1158_s4 }
  0x1a   : > { %v1331_v28 = vand.u32 4294901760, %v189_v24  ;;  %v1333_v29 = vand.u32 4294901760, %v192_v25  ;;  %v289_v32 = vand.u32 4294901760, %v195_v26  ;;  %v198_v33 = vsel %vm187_vm0, %v175_v27, 0  ;;  %1049 = vmatprep.subr.bf16.mxu1 %v1048_v38  ;;  %p1161_p1 = scmp.lt.s32.totalorder %s1159_s5, %s1153_s29 }
  0x1b   : > { %v299_v39 = vand.u32 4294901760, %v198_v33 }
  0x1c   : > { %v270_v36 = vsub.f32 %v189_v24, %v1331_v28  ;;  %v280_v37 = vsub.f32 %v192_v25, %v1333_v29  ;;  %v290_v40 = vsub.f32 %v195_v26, %v289_v32  ;;  %p1162_p2 = por %p1161_p1, %p1160_p0 }
  0x1d   : > { %v300_v43 = vsub.f32 %v198_v33, %v299_v39 }
  0x1e   : > { %v271_v41 = vand.u32 4294901760, %v270_v36  ;;  %v281_v42 = vand.u32 4294901760, %v280_v37  ;;  %v291_v44 = vand.u32 4294901760, %v290_v40  ;;  %p1163_p3 = pnand %p1162_p2, %p1156_p13 }
  0x1f   : > { %v301_v50 = vand.u32 4294901760, %v300_v43 }
  0x20   : > { %1006 = vmatprep.mubr.f32.mxu0 %v271_v41  ;;  %v272_v48 = vsub.f32 %v270_v36, %v271_v41  ;;  %v282_v49 = vsub.f32 %v280_v37, %v281_v42  ;;  %v292_v51 = vsub.f32 %v290_v40, %v291_v44 }
  0x21   : > { %1007 = vmatmul.mubr.f32.vlgmr.msra.gmra.mrb[0].mxu0 %v281_v42  ;;  %v302_v54 = vsub.f32 %v300_v43, %v301_v50 }
  0x22   : > { %1075 = vmatpush3.bf16.msra.mxu0 %v1072_v20  ;;  %v273_v52 = vand.u32 4294901760, %v272_v48  ;;  %1009 = vmatprep.mubr.f32.mxu0 %v291_v44  ;;  %v283_v53 = vand.u32 4294901760, %v282_v49  ;;  %v293_v55 = vand.u32 4294901760, %v292_v51 }
  0x23   : > { %1077 = vmatprep.subr.bf16.mxu0 %v1076_v45  ;;  %v303_v57 = vand.u32 4294901760, %v302_v54 }
  0x24   : > { %964 = vmatprep.mubr.f32.mxu1 %v273_v52 }
  0x25   : > { %965 = vmatmul.mubr.f32.vlgmr.msra.gmra.mrb[0].mxu1 %v283_v53  ;;  %1010 = vmatmul.mubr.f32.gmra.mrb[2].mxu0 %v301_v50 }
  0x26   : > { %1051 = vmatpush3.bf16.msra.mxu1 %v1048_v38  ;;  %1079 = vmatpush3.bf16.msra.mxu0 %v1076_v45 }
  0x27   : > { %967 = vmatprep.mubr.f32.mxu1 %v293_v55  ;;  %1053 = vmatprep.subr.bf16.mxu1 %v1052_v56 }
  0x28   : > { %1020 = vmatprep.mubr.f32.mxu0 %v1331_v28  ;;  %1081 = vmatprep.subr.bf16.mxu0 %v1301_v8 }
  0x29   : > { %968 = vmatmul.mubr.f32.gmra.mrb[2].mxu1 %v303_v57  ;;  %1021 = vmatmul.mubr.f32.vlgmr.msra.gmra.mrb[0].mxu0 %v1333_v29 }
  0x2a   : > { %1055 = vmatpush3.bf16.msra.mxu1 %v1052_v56  ;;  %1083 = vmatpush3.bf16.msra.mxu0 %v1301_v8 }
  0x2b   : > { %978 = vmatprep.mubr.f32.mxu1 %v1331_v28  ;;  %1057 = vmatprep.subr.bf16.mxu1 %v1056_v58 }
  0x2c   : > { %1023 = vmatprep.mubr.f32.mxu0 %v289_v32  ;;  %1085 = vmatprep.subr.bf16.mxu0 %v1309_v12 }
  0x2d   : > { %979 = vmatmul.mubr.f32.vlgmr.msra.gmra.mrb[0].mxu1 %v1333_v29  ;;  %1024 = vmatmul.mubr.f32.gmra.mrb[2].mxu0 %v299_v39 }
  0x2e   : > { %1059 = vmatpush3.bf16.msra.mxu1 %v1056_v58  ;;  %1087 = vmatpush3.bf16.msra.mxu0 %v1309_v12 }
  0x2f   : > { %981 = vmatprep.mubr.f32.mxu1 %v289_v32  ;;  %1061 = vmatprep.subr.bf16.mxu1 %v1060_v59 }
  0x30   : > { %1034 = vmatprep.mubr.f32.mxu0 %v1331_v28 }
  0x31   : > { %982 = vmatmul.mubr.f32.gmra.mrb[2].mxu1 %v299_v39  ;;  %1035 = vmatmul.mubr.f32.vlgmr.msra.gmra.mrb[0].mxu0 %v1333_v29 }
  0x32   : > { %1063 = vmatpush3.bf16.msra.mxu1 %v1060_v59  ;;  %992 = vmatprep.mubr.f32.mxu1 %v270_v36 }
  0x33   : > { %1037 = vmatprep.mubr.f32.mxu0 %v289_v32 }
  0x35   : > { %993 = vmatmul.mubr.f32.vlgmr.msra.gmra.mrb[0].mxu1 %v280_v37  ;;  %1038 = vmatmul.mubr.f32.gmra.mrb[2].mxu0 %v299_v39 }
  0x36   : > { %995 = vmatprep.mubr.f32.mxu1 %v290_v40 }
  0x39   : > { %996 = vmatmul.mubr.f32.gmra.mrb[2].mxu1 %v300_v43 }
 0x104   : > { %v1036_v60 = vpop.f32.mrb[0].mxu0 }
 0x105   : > { %v792_v61 = vpop.f32.mrb[1].mxu0 }
 0x108   : > { %v994_v63 = vpop.f32.mrb[0].mxu1  ;;  %v1039_v0 = vpop.f32.mrb[2].mxu0 }
 0x109   : > { %v1088_v1 = vadd.f32 %v994_v63, %v901_v62  ;;  %v494_v2 = vpop.f32.mrb[1].mxu1  ;;  %v804_v3 = vpop.f32.mrb[3].mxu0 }
 0x10a   : > { %v1090_v4 = vadd.f32 %v901_v62, %v494_v2 }
 0x10b   : > { %v1089_v5 = vadd.f32 %v1088_v1, %v1036_v60 }
 0x10c   : > { %v1091_v6 = vadd.f32 %v1090_v4, %v792_v61  ;;  %v997_v7 = vpop.f32.mrb[2].mxu1 }
 0x10d   : > { %815 = vst [vmem:[%s164_s20 + $0x8] sm:$0xff] %v1089_v5  ;;  %v1092_v8 = vadd.f32 %v997_v7, %v901_v62  ;;  %v508_v9 = vpop.f32.mrb[3].mxu1 }
 0x10e   : > { %814 = vst [vmem:[%s164_s20] sm:$0xff] %v1091_v6  ;;  %v1094_v10 = vadd.f32 %v901_v62, %v508_v9 }
 0x10f   : > { %v1093_v11 = vadd.f32 %v1092_v8, %v1039_v0 }
 0x110   : > { %v1095_v12 = vadd.f32 %v1094_v10, %v804_v3 }
 0x111   : > { %817 = vst [vmem:[%s164_s20 + $0x18] sm:$0xff] %v1093_v11 }
 0x112   : > { %816 = vst [vmem:[%s164_s20 + $0x10] sm:$0xff] %v1095_v12 }
 0x113   : > { %1166 = shalt.err (!%p1163_p3)
}
 0x114   : > { %s1167_s6 = scalar_lea.hbm %s1366_s28, 512  ;;  %s1171_s9 = scalar_lea.hbm %s1412_s3, 1024 }
 0x115   : > { %p1168_p4 = scmp.ne.s32.totalorder %s1366_s28, %s1167_s6  ;;  %p1172_p9 = scmp.lt.u32.totalorder %s1366_s28, %s1412_s3 }
 0x116   : > { %p1173_p10 = scmp.lt.u32.totalorder %s1171_s9, %s1167_s6  ;;  %p1175_p12 = scmp.lt.u32.totalorder %s1167_s6, %s1366_s28 }
 0x117   : > { %p1169_p7 = pnand %p1168_p4, %p1278_p5 }
 0x118   : > { %p1174_p11 = por %p1173_p10, %p1172_p9 }
 0x119   : > { %p1170_p8 = pneg %p1169_p7 }
 0x11a   : > { %p1176_p13 = por %p1175_p12, %p1174_p11 }
 0x11c   : > { %p1177_p0 = pnand %p1176_p13, %p1170_p8 }
 0x11e   : > { %1180 = shalt.err (!%p1177_p0)
}
 0x11f   : > { %s1218_s17 = smov 128   ;;  %s1219_s19 = smov 8  }
 0x120   : > { %1112 = dma.vmem_to_hbm [thread:$0]  (%p1278_p5), %s1361_s24, 512, %s1366_s28, %s1368_s16, %s1218_s17, %s1218_s17, %s1219_s19  }
 0x121 PF: > { %p1118_p1 = scmp.ge.s32.totalorder %s1215_s15, 2  ;;  %s847_s20 = sand.u32 1, %s1203_s12  }
 0x122   : > { %s848_s25 = scalar_lea.sflag [#allocation3], %s847_s20 }
 0x123   : > { %p1115_p2 = pnand %p1118_p1, %p1282_p6 }
 0x125   : > { %1198 = dma.done.wait (!%p1115_p2), %s848_s25, 512  }
 0x126   : > { %1200 = vsyncadd (!%p1115_p2), %s848_s25, 4294966784  ;;  %p13_p3 = scmp.ge.s32.totalorder %s1265_s18, 4   ;;  %s1415_s12 = smov %s1207_s13 }
 0x127   : > { %s1416_s13 = smov %s1211_s14  ;;  %s1417_s14 = smov %s1276_s21 }
 0x128   : > { %s1418_s15 = smov %s1265_s18  ;;  %15 = sbr.rel (!%p13_p3) target bundleno = 3 (0x3), region = 67 }
 0x12f   :  { %853 = vsyncpa [#allocation3], 1 }
 0x130   :  { %855 = vsyncpa [#allocation3 + $0x1], 1 }

</bundles_post_ra>
